<compile_context>
chip_gen: v6e
topology: v6e:2x2x1
jax: 0.10.0
libtpu: 0.0.40
codegen_flags: <defaults>
</compile_context>

<pallas_src>
import math

import jax
import jax.numpy as jnp
from jax.experimental import pallas as pl
from jax.experimental.pallas import tpu as pltpu


def _erf(x):
    # Abramowitz & Stegun 7.1.26 rational approximation (max abs err ~1.5e-7),
    # built only from primitives guaranteed to lower in Mosaic.
    a1, a2, a3, a4, a5 = 0.254829592, -0.284496736, 1.421413741, -1.453152027, 1.061405429
    p = 0.3275911
    ax = jnp.abs(x)
    d = 1.0 + p * ax
    # EUP approximate reciprocal (free VLIW slot) + one Newton-Raphson step to
    # restore ~f32 precision instead of a VALU divide.
    t = pl.reciprocal(d, approx=True)
    t = t * (2.0 - d * t)
    poly = ((((a5 * t + a4) * t + a3) * t + a2) * t + a1) * t
    e = 1.0 - poly * jnp.exp(-ax * ax)         # exp -> EUP
    return jnp.where(x >= 0.0, e, -e)


def _gelu_exact(x):
    # Matches torch.nn.functional.gelu default (erf-based), NOT the tanh approx.
    return 0.5 * x * (1.0 + _erf(x * (1.0 / math.sqrt(2.0))))


def _gelu_kernel(x_ref, o_ref):
    o_ref[...] = _gelu_exact(x_ref[...])


def gelu_pallas(x, *, block_rows=1024, block_cols=512):
    """Elementwise erf-GeLU for any input shape (computed in f32)."""
    assert block_rows % 8 == 0 and block_cols % 128 == 0

    orig_shape = x.shape
    orig_dtype = x.dtype
    flat = x.reshape(-1).astype(jnp.float32)
    n = int(flat.size)

    cols = block_cols                               # lane-dense output (multiple of 128)
    rows = pl.cdiv(max(n, 1), cols)
    if rows <= block_rows:
        # Single full-extent block (allowed regardless of (8,128) divisibility).
        # Inputs this small (< ~0.5M elems) finish in ~a microsecond anyway, so
        # we don't bother splitting further for the v7x megacore.
        brows = rows
        grid_rows = rows
    else:
        brows = block_rows
        grid_rows = pl.cdiv(rows, brows) * brows    # whole number of blocks

    padded = grid_rows * cols
    if padded != n:
        flat = jnp.pad(flat, (0, padded - n))       # gelu(0) == 0, sliced off below
    x2d = flat.reshape(grid_rows, cols)

    out = pl.pallas_call(
        _gelu_kernel,
        out_shape=jax.ShapeDtypeStruct((grid_rows, cols), jnp.float32),
        grid=(grid_rows // brows,),
        in_specs=[pl.BlockSpec((brows, cols), lambda i: (i, 0))],
        out_specs=pl.BlockSpec((brows, cols), lambda i: (i, 0)),
        compiler_params=pltpu.CompilerParams(
            dimension_semantics=("parallel",),      # megacore split on v7x
            vmem_limit_bytes=32 * 1024 * 1024,      # safe cap on v5e/v6e/v7x
        ),
    )(x2d)

    return out.reshape(-1)[:n].reshape(orig_shape).astype(orig_dtype)


if __name__ == "__main__":
    key = jax.random.PRNGKey(0)
    k1, k2 = jax.random.split(key)

    # Small shape consistent with where GeLU sits in the GNN (hidden
    # activations after a Linear): (batch=2, seq=8, hidden=32).
    x_small = jax.random.normal(k1, (2, 8, 32), jnp.float32) * 2.0
    y_small = jax.block_until_ready(gelu_pallas(x_small))
    ref_small = jax.nn.gelu(x_small, approximate=False)
    assert y_small.shape == x_small.shape
    assert bool(jnp.all(jnp.isfinite(y_small)))
    assert bool(jnp.max(jnp.abs(y_small - ref_small)) < 1e-4)

    # Larger input to exercise the multi-step, lane-dense tiled path
    # (rows=8192, block=(1024,512) -> grid of 8 parallel steps).
    x_big = jax.random.normal(k2, (1024, 4096), jnp.float32) * 3.0
    y_big = jax.block_until_ready(gelu_pallas(x_big))
    ref_big = jax.nn.gelu(x_big, approximate=False)
    assert bool(jnp.all(jnp.isfinite(y_big)))
    assert bool(jnp.max(jnp.abs(y_big - ref_big)) < 1e-4)

    print("KERNEL_OK")
</pallas_src>

<mosaic_0001>
module attributes {stable_mosaic.version = 11 : i64} {
  func.func @_gelu_kernel(%arg0: i32, %arg1: memref<1x512xf32, #tpu.memory_space<vmem>>, %arg2: memref<1x512xf32, #tpu.memory_space<vmem>>) attributes {dimension_semantics = [#tpu.dimension_semantics<parallel>], iteration_bounds = array<i64: 1>, scalar_prefetch = 0 : i64, scratch_operands = 0 : i64, tpu.core_type = #tpu.core_type<tc>, window_params = [{transform_indices = @transform_0, window_bounds = array<i64: 1, 512>}, {transform_indices = @transform_1, window_bounds = array<i64: 1, 512>}]} {
    %c0 = arith.constant 0 : index
    %c0_0 = arith.constant 0 : index
    %0 = vector.load %arg1[%c0, %c0_0] : memref<1x512xf32, #tpu.memory_space<vmem>>, vector<1x512xf32>
    %cst = arith.constant 5.000000e-01 : f32
    %1 = vector.broadcast %cst : f32 to vector<1x512xf32>
    %2 = arith.mulf %1, %0 : vector<1x512xf32>
    %cst_1 = arith.constant 0.707106769 : f32
    %3 = vector.broadcast %cst_1 : f32 to vector<1x512xf32>
    %4 = arith.mulf %0, %3 : vector<1x512xf32>
    %5 = math.absf %4 : vector<1x512xf32>
    %cst_2 = arith.constant 0.327591091 : f32
    %6 = vector.broadcast %cst_2 : f32 to vector<1x512xf32>
    %7 = arith.mulf %6, %5 : vector<1x512xf32>
    %cst_3 = arith.constant 1.000000e+00 : f32
    %8 = vector.broadcast %cst_3 : f32 to vector<1x512xf32>
    %9 = arith.addf %8, %7 : vector<1x512xf32>
    %10 = tpu.reciprocal %9 {approx = true} : vector<1x512xf32> -> vector<1x512xf32>
    %11 = arith.mulf %9, %10 : vector<1x512xf32>
    %cst_4 = arith.constant 2.000000e+00 : f32
    %12 = vector.broadcast %cst_4 : f32 to vector<1x512xf32>
    %13 = arith.subf %12, %11 : vector<1x512xf32>
    %14 = arith.mulf %10, %13 : vector<1x512xf32>
    %cst_5 = arith.constant 1.06140542 : f32
    %15 = vector.broadcast %cst_5 : f32 to vector<1x512xf32>
    %16 = arith.mulf %15, %14 : vector<1x512xf32>
    %cst_6 = arith.constant -1.45315206 : f32
    %17 = vector.broadcast %cst_6 : f32 to vector<1x512xf32>
    %18 = arith.addf %16, %17 : vector<1x512xf32>
    %19 = arith.mulf %18, %14 : vector<1x512xf32>
    %cst_7 = arith.constant 1.42141378 : f32
    %20 = vector.broadcast %cst_7 : f32 to vector<1x512xf32>
    %21 = arith.addf %19, %20 : vector<1x512xf32>
    %22 = arith.mulf %21, %14 : vector<1x512xf32>
    %cst_8 = arith.constant -0.284496725 : f32
    %23 = vector.broadcast %cst_8 : f32 to vector<1x512xf32>
    %24 = arith.addf %22, %23 : vector<1x512xf32>
    %25 = arith.mulf %24, %14 : vector<1x512xf32>
    %cst_9 = arith.constant 0.254829586 : f32
    %26 = vector.broadcast %cst_9 : f32 to vector<1x512xf32>
    %27 = arith.addf %25, %26 : vector<1x512xf32>
    %28 = arith.mulf %27, %14 : vector<1x512xf32>
    %cst_10 = arith.constant 0.000000e+00 : f32
    %29 = vector.broadcast %cst_10 : f32 to vector<1x512xf32>
    %30 = arith.subf %29, %5 : vector<1x512xf32>
    %31 = arith.mulf %30, %5 : vector<1x512xf32>
    %32 = math.exp %31 : vector<1x512xf32>
    %33 = arith.mulf %28, %32 : vector<1x512xf32>
    %cst_11 = arith.constant 1.000000e+00 : f32
    %34 = vector.broadcast %cst_11 : f32 to vector<1x512xf32>
    %35 = arith.subf %34, %33 : vector<1x512xf32>
    %cst_12 = arith.constant 0.000000e+00 : f32
    %36 = vector.broadcast %cst_12 : f32 to vector<1x512xf32>
    %37 = arith.cmpf oge, %4, %36 : vector<1x512xf32>
    %cst_13 = arith.constant 0.000000e+00 : f32
    %38 = vector.broadcast %cst_13 : f32 to vector<1x512xf32>
    %39 = arith.subf %38, %35 : vector<1x512xf32>
    %40 = arith.select %37, %35, %39 : vector<1x512xi1>, vector<1x512xf32>
    %cst_14 = arith.constant 1.000000e+00 : f32
    %41 = vector.broadcast %cst_14 : f32 to vector<1x512xf32>
    %42 = arith.addf %41, %40 : vector<1x512xf32>
    %43 = arith.mulf %2, %42 : vector<1x512xf32>
    %c0_15 = arith.constant 0 : index
    %c0_16 = arith.constant 0 : index
    %44 = vector.load %arg2[%c0_15, %c0_16] : memref<1x512xf32, #tpu.memory_space<vmem>>, vector<1x512xf32>
    tpu.vector_store %arg2[%c0_15, %c0_16], %43 {strides = array<i32>} : memref<1x512xf32, #tpu.memory_space<vmem>>, vector<1x512xf32>,
    return
  }
  func.func @transform_0(%arg0: i32) -> (i32, i32) {
    %c0_i32 = arith.constant 0 : i32
    %c0_i32_0 = arith.constant 0 : i32
    return %arg0, %c0_i32 : i32, i32
  }
  func.func @transform_1(%arg0: i32) -> (i32, i32) {
    %c0_i32 = arith.constant 0 : i32
    %c0_i32_0 = arith.constant 0 : i32
    return %arg0, %c0_i32 : i32, i32
  }
}

</mosaic_0001>

<bundles_post_ra>
// kernel: tpu_custom_call.1
= control target key start
LH: loop header
LB: loop body
LE: loop exit
PB: predicated region body
PF: predicated region fallthrough
CT: control target
= control target key end

     0   :  { %6 = vsyncpa [#allocation3], 0  ;;  %s139_s0 = inlined_call_operand.hbm [shape: f32[1,512], index: 0, kind: input, shape index: {}]   ;;  %s140_s1 = inlined_call_operand.hbm [shape: f32[1,512], index: 1, kind: output, shape index: {}]  }
   0x1   :  { %7 = vsyncpa [#allocation4], 0  ;;  %s121_s6 = smov [#allocation2]  }
   0x2   :  { %s14_s7 = sshll.u32 %s121_s6, 4  ;;  %s15_s7 = int_to_ptr.vmem [resolvable:$true] %s14_s7 }
   0x3   :  { %s85_s8 = scalar_lea.vmem %s15_s7, 64  ;;  %p90_p1 = scmp.lt.s32.totalorder %s15_s7, %s15_s7 }
   0x4   :  { %p86_p0 = scmp.ne.s32.totalorder %s15_s7, %s85_s8  ;;  %p91_p2 = scmp.lt.s32.totalorder %s85_s8, %s85_s8 }
   0x6   :  { %p92_p3 = por %p91_p2, %p90_p1 }
   0x8   :  { %p93_p4 = pnand %p92_p3, %p86_p0 }
   0xa   :  { %96 = shalt.err (!%p93_p4)
}
   0xb   :  { %17 = dma.hbm_to_vmem [thread:$0]  %s139_s0, 64, %s15_s7, [#allocation3]  }
   0xc   :  { %117 = dma.done.wait [#allocation3], 64  }
   0xd   :  { %118 = vsyncadd [#allocation3], 4294967232  ;;  %v21_v0 = vld [vmem:[#allocation2] sm:$0xf]  ;;  %v51_v25 = vlaneseq  ;;  %s122_s0 = smov [#allocation5]  }
   0xe   :  { %v23_v1 = vmul.f32 0.70710677, %v21_v0  ;;  %v22_v26 = vmul.f32 0.5, %v21_v0  ;;  %s62_s11 = sshll.u32 %s122_s0, 4  ;;  %s63_s11 = int_to_ptr.vmem [resolvable:$true] %s62_s11 }
   0xf   :  { %vm53_vm1 = vcmp.lt.s32.totalorder %v51_v25, 512  ;;  %s97_s12 = scalar_lea.vmem %s63_s11, 64  ;;  %p102_p6 = scmp.lt.s32.totalorder %s63_s11, %s63_s11 }
  0x10   :  { %v24_v2 = vand.u32 2147483647, %v23_v1  ;;  %vm46_vm0 = vcmp.ge.f32.partialorder %v23_v1, 0.0  ;;  %p98_p5 = scmp.ne.s32.totalorder %s63_s11, %s97_s12  ;;  %p103_p7 = scmp.lt.s32.totalorder %s97_s12, %s97_s12 }
  0x12   :  { %v25_v3 = vmul.f32 0.3275911, %v24_v2  ;;  %v40_v5 = vsub.f32 0.0, %v24_v2  ;;  %p104_p8 = por %p103_p7, %p102_p6 }
  0x14   :  { %v26_v4 = vadd.f32 1.0, %v25_v3  ;;  %v41_v8 = vmul.f32 %v40_v5, %v24_v2  ;;  %p105_p9 = pnand %p104_p8, %p98_p5 }
  0x16   :  { %73 = vrcp.f32 %v26_v4  ;;  %v42_v11 = vmul.f32 1.442695, %v41_v8 }
  0x18   :  { %75 = vpow2.f32 %v42_v11 }
  0x23   :  { %v74_v6 = vpop.eup %73 }
  0x24   :  { %v28_v7 = vmul.f32 %v74_v6, %v26_v4 }
  0x25   :  { %v76_v20 = vpop.eup %75 }
  0x26   :  { %v29_v9 = vsub.f32 2.0, %v28_v7 }
  0x28   :  { %v30_v10 = vmul.f32 %v74_v6, %v29_v9 }
  0x2a   :  { %v31_v12 = vmul.f32 1.0614054, %v30_v10 }
  0x2c   :  { %v32_v13 = vadd.f32 -1.4531521, %v31_v12 }
  0x2e   :  { %v33_v14 = vmul.f32 %v32_v13, %v30_v10 }
  0x30   :  { %v34_v15 = vadd.f32 1.4214138, %v33_v14 }
  0x32   :  { %v35_v16 = vmul.f32 %v34_v15, %v30_v10 }
  0x34   :  { %v36_v17 = vadd.f32 -0.28449672, %v35_v16 }
  0x36   :  { %v37_v18 = vmul.f32 %v36_v17, %v30_v10 }
  0x38   :  { %v38_v19 = vadd.f32 0.2548296, %v37_v18 }
  0x3a   :  { %v39_v21 = vmul.f32 %v38_v19, %v30_v10 }
  0x3c   :  { %v44_v22 = vmul.f32 %v76_v20, %v39_v21 }
  0x3e   :  { %v45_v23 = vsub.f32 1.0, %v44_v22 }
  0x40   :  { %v47_v24 = vsub.f32 0.0, %v45_v23 }
  0x42   :  { %v48_v27 = vsel %vm46_vm0, %v45_v23, %v47_v24 }
  0x43   :  { %v49_v28 = vadd.f32 1.0, %v48_v27 }
  0x45   :  { %v50_v29 = vmul.f32 %v49_v28, %v22_v26 }
  0x47   :  { %55 = vst.msk [vmem:[#allocation5] sm:$0xf] %vm53_vm1, %v50_v29 }
  0x48   :  { %108 = shalt.err (!%p105_p9)
}
  0x49   :  { %65 = dma.vmem_to_hbm [thread:$0]  %s63_s11, 64, %s140_s1, [#allocation4]  }
  0x4a   :  { %119 = dma.done.wait [#allocation4], 64  }
  0x4b   :  { %120 = vsyncadd [#allocation4], 4294967232 }
  0x4c   :  { %69 = vsyncpa [#allocation3], 1 }
  0x4d   :  { %70 = vsyncpa [#allocation4], 1 }

</bundles_post_ra>
